<compile_context>
chip_gen: v5e
topology: v5e:2x2
jax: 0.10.0
libtpu: 0.0.40
codegen_flags: <defaults>
</compile_context>

<pallas_src>
import jax
import jax.numpy as jnp
from jax.experimental import pallas as pl
from jax.experimental.pallas import tpu as pltpu

KERNEL = 3
STRIDE = 2


def maxpool3s2_kernel(x_ref, o_ref):
    """Max-pool a block of (n, c) planes.

    x_ref: (Rb, H, W)       VMEM tile (W on lanes, H on sublanes)
    o_ref: (Rb, Ho, W-2)    window maxima at every column offset, rows already
                            subsampled with stride 2 (column stride-2 pick is
                            done by the wrapper).
    """
    _, H, W = x_ref.shape
    _, Ho, _ = o_ref.shape

    x = x_ref[...]  # (Rb, H, W)

    # 3-row window max at every vertical offset: sublane-shifted slices, VPU max.
    hmax = jnp.maximum(
        jnp.maximum(x[:, 0:H - 2, :], x[:, 1:H - 1, :]),
        x[:, 2:H, :],
    )  # (Rb, H-2, W)

    # 3-col window max at every horizontal offset: lane-shifted slices, VPU max.
    hwmax = jnp.maximum(
        jnp.maximum(hmax[:, :, 0:W - 2], hmax[:, :, 1:W - 1]),
        hmax[:, :, 2:W],
    )  # (Rb, H-2, W-2); element (r, i, j) = max over x[r, i:i+3, j:j+3]

    # Stride-2 vertical subsample: short static loop over output rows,
    # contiguous keepdims slices + one concat along a non-lane axis.
    rows = [hwmax[:, 2 * ho:2 * ho + 1, :] for ho in range(Ho)]
    o_ref[...] = jnp.concatenate(rows, axis=1)  # (Rb, Ho, W-2)


@jax.jit
def pool2_forward(x_nchw):
    """Forward pass of Pool2: MaxPool2d(kernel_size=3, stride=2) on NCHW input."""
    N, C, H, W = x_nchw.shape
    Ho = (H - KERNEL) // STRIDE + 1
    Wo = (W - KERNEL) // STRIDE + 1

    R = N * C
    x_rows = x_nchw.reshape(R, H, W)  # free reshape (contiguous), no transpose

    # Block size: as many planes per grid step as reasonable (big contiguous DMAs),
    # but keep >= 2 grid steps when possible (v7x has 2 TensorCores) and stay
    # well inside the scoped-VMEM default even on v7x (64 MiB physical).
    if R >= 2:
        target = min(R // 2, 128)
    else:
        target = 1
    Rb = max(d for d in range(1, target + 1) if R % d == 0)  # divides R exactly

    y_wide = pl.pallas_call(
        maxpool3s2_kernel,
        out_shape=jax.ShapeDtypeStruct((R, Ho, W - 2), x_rows.dtype),
        grid=(R // Rb,),
        in_specs=[pl.BlockSpec((Rb, H, W), lambda r: (r, 0, 0))],
        out_specs=pl.BlockSpec((Rb, Ho, W - 2), lambda r: (r, 0, 0)),
        compiler_params=pltpu.CompilerParams(dimension_semantics=("parallel",)),
    )(x_rows)

    # Stride-2 column pick (lane-dim compaction) done as a trivial XLA strided
    # slice on the small intermediate, then a free reshape back to NCHW.
    y = y_wide[:, :, : 2 * Wo - 1 : STRIDE]  # (R, Ho, Wo)
    return y.reshape(N, C, Ho, Wo)


if __name__ == "__main__":
    # Pool2 has no learnable parameters; only deterministic input is needed.
    key = jax.random.PRNGKey(0)
    x = jax.random.normal(key, (2, 4, 16, 16), dtype=jnp.float32)  # NCHW

    y = pool2_forward(x)
    y = jax.block_until_ready(y)

    # Pure-JAX reference (exact same op) for a sanity check.
    y_ref = jax.lax.reduce_window(
        x,
        init_value=-jnp.inf,
        computation=jax.lax.max,
        window_dimensions=(1, 1, KERNEL, KERNEL),
        window_strides=(1, 1, STRIDE, STRIDE),
        padding="VALID",
    )
    assert y.shape == (2, 4, 7, 7), y.shape
    assert jnp.allclose(y, y_ref), "Pallas maxpool mismatch vs reference"

    print("KERNEL_OK")
</pallas_src>

<mosaic_0001>
module attributes {stable_mosaic.version = 11 : i64} {
  func.func @maxpool3s2_kernel(%arg0: i32, %arg1: memref<4x16x16xf32, #tpu.memory_space<vmem>>, %arg2: memref<4x7x14xf32, #tpu.memory_space<vmem>>) attributes {dimension_semantics = [#tpu.dimension_semantics<parallel>], iteration_bounds = array<i64: 2>, scalar_prefetch = 0 : i64, scratch_operands = 0 : i64, tpu.core_type = #tpu.core_type<tc>, window_params = [{transform_indices = @transform_0, window_bounds = array<i64: 4, 16, 16>}, {transform_indices = @transform_1, window_bounds = array<i64: 4, 7, 14>}]} {
    %c0 = arith.constant 0 : index
    %c0_0 = arith.constant 0 : index
    %c0_1 = arith.constant 0 : index
    %0 = vector.load %arg1[%c0, %c0_0, %c0_1] : memref<4x16x16xf32, #tpu.memory_space<vmem>>, vector<4x16x16xf32>
    %1 = vector.extract_strided_slice %0 {offsets = [0, 0, 0], sizes = [4, 14, 16], strides = [1, 1, 1]} : vector<4x16x16xf32> to vector<4x14x16xf32>
    %2 = vector.extract_strided_slice %0 {offsets = [0, 1, 0], sizes = [4, 14, 16], strides = [1, 1, 1]} : vector<4x16x16xf32> to vector<4x14x16xf32>
    %3 = arith.maximumf %1, %2 : vector<4x14x16xf32>
    %4 = vector.extract_strided_slice %0 {offsets = [0, 2, 0], sizes = [4, 14, 16], strides = [1, 1, 1]} : vector<4x16x16xf32> to vector<4x14x16xf32>
    %5 = arith.maximumf %3, %4 : vector<4x14x16xf32>
    %6 = vector.extract_strided_slice %5 {offsets = [0, 0, 0], sizes = [4, 14, 14], strides = [1, 1, 1]} : vector<4x14x16xf32> to vector<4x14x14xf32>
    %7 = vector.extract_strided_slice %5 {offsets = [0, 0, 1], sizes = [4, 14, 14], strides = [1, 1, 1]} : vector<4x14x16xf32> to vector<4x14x14xf32>
    %8 = arith.maximumf %6, %7 : vector<4x14x14xf32>
    %9 = vector.extract_strided_slice %5 {offsets = [0, 0, 2], sizes = [4, 14, 14], strides = [1, 1, 1]} : vector<4x14x16xf32> to vector<4x14x14xf32>
    %10 = arith.maximumf %8, %9 : vector<4x14x14xf32>
    %11 = vector.extract_strided_slice %10 {offsets = [0, 0, 0], sizes = [4, 1, 14], strides = [1, 1, 1]} : vector<4x14x14xf32> to vector<4x1x14xf32>
    %12 = vector.extract_strided_slice %10 {offsets = [0, 2, 0], sizes = [4, 1, 14], strides = [1, 1, 1]} : vector<4x14x14xf32> to vector<4x1x14xf32>
    %13 = vector.extract_strided_slice %10 {offsets = [0, 4, 0], sizes = [4, 1, 14], strides = [1, 1, 1]} : vector<4x14x14xf32> to vector<4x1x14xf32>
    %14 = vector.extract_strided_slice %10 {offsets = [0, 6, 0], sizes = [4, 1, 14], strides = [1, 1, 1]} : vector<4x14x14xf32> to vector<4x1x14xf32>
    %15 = vector.extract_strided_slice %10 {offsets = [0, 8, 0], sizes = [4, 1, 14], strides = [1, 1, 1]} : vector<4x14x14xf32> to vector<4x1x14xf32>
    %16 = vector.extract_strided_slice %10 {offsets = [0, 10, 0], sizes = [4, 1, 14], strides = [1, 1, 1]} : vector<4x14x14xf32> to vector<4x1x14xf32>
    %17 = vector.extract_strided_slice %10 {offsets = [0, 12, 0], sizes = [4, 1, 14], strides = [1, 1, 1]} : vector<4x14x14xf32> to vector<4x1x14xf32>
    %18 = tpu.concatenate %11, %12, %13, %14, %15, %16, %17 in 1 : vector<4x1x14xf32>, vector<4x1x14xf32>, vector<4x1x14xf32>, vector<4x1x14xf32>, vector<4x1x14xf32>, vector<4x1x14xf32>, vector<4x1x14xf32> -> vector<4x7x14xf32>
    %c0_2 = arith.constant 0 : index
    %c0_3 = arith.constant 0 : index
    %c0_4 = arith.constant 0 : index
    %19 = vector.load %arg2[%c0_2, %c0_3, %c0_4] : memref<4x7x14xf32, #tpu.memory_space<vmem>>, vector<4x7x14xf32>
    tpu.vector_store %arg2[%c0_2, %c0_3, %c0_4], %18 {strides = array<i32>} : memref<4x7x14xf32, #tpu.memory_space<vmem>>, vector<4x7x14xf32>,
    return
  }
  func.func @transform_0(%arg0: i32) -> (i32, i32, i32) {
    %c0_i32 = arith.constant 0 : i32
    %c0_i32_0 = arith.constant 0 : i32
    %c0_i32_1 = arith.constant 0 : i32
    return %arg0, %c0_i32, %c0_i32_0 : i32, i32, i32
  }
  func.func @transform_1(%arg0: i32) -> (i32, i32, i32) {
    %c0_i32 = arith.constant 0 : i32
    %c0_i32_0 = arith.constant 0 : i32
    %c0_i32_1 = arith.constant 0 : i32
    return %arg0, %c0_i32, %c0_i32_0 : i32, i32, i32
  }
}

</mosaic_0001>

<bundles_post_ra>
// kernel: pool2_forward.1
= control target key start
LH: loop header
LB: loop body
LE: loop exit
PB: predicated region body
PF: predicated region fallthrough
CT: control target
= control target key end

     0   :  { %6 = vsyncpa [#allocation3], 0  ;;  %s745_s0 = inlined_call_operand.hbm [shape: f32[8,16,16], index: 0, kind: input, shape index: {}]   ;;  %s746_s1 = inlined_call_operand.vmem [shape: f32[8,7,14], index: 1, kind: output, shape index: {}]  }
   0x1   :  { %8 = vsyncpa [#allocation3 + $0x1], 0  ;;  %s584_s6 = smov 0   ;;  %s586_s7 = smov 0  }
   0x2   :  { %s588_s8 = smov 0   ;;  %s590_s9 = smov 0  }
   0x3 LB: > { %s445_s10 = sadd.s32 4294967295, %s568_s9   ;;  %s604_s11 = sadd.s32 1, %s568_s9   ;;  %s568_s9 = sphi %s590_s9, %s753_s9   ;;  %s564_s8 = sphi %s588_s8, %s752_s8   ;;  %s560_s7 = sphi %s586_s7, %s751_s7   ;;  %s556_s6 = sphi %s584_s6, %s750_s6  }
   0x4   : > { %s18_s12 = ssub.s32 %s568_s9, %s604_s11  ;;  %s21_s13 = sadd.s32 1, %s564_s8 }
   0x5   : > { %p19_p0 = scmp.eq.s32.totalorder %s18_s12, 0  ;;  %p28_p1 = scmp.ne.s32.totalorder %s564_s8, %s560_s7 }
   0x6   : > { %p29_p2 = scmp.eq.s32.totalorder %s568_s9, 0  ;;  %p34_p3 = scmp.ne.s32.totalorder %s560_s7, %s556_s6 }
   0x7   : > { %s614_s14 = scalar_select %p19_p0, %s564_s8, %s21_s13  }
   0x8   : > { %p616_p4 = por %p29_p2, %p28_p1  ;;  %p35_p5 = scmp.eq.s32.totalorder %s445_s10, 0 }
   0x9   : > { %p467_p6 = scmp.lt.s32.totalorder %s568_s9, 2  ;;  %s84_s17 = sand.u32 1, %s564_s8  }
   0xa   : > { %p623_p7 = por %p35_p5, %p34_p3  ;;  %s449_s18 = sshll.u32 %s84_s17, 6 }
   0xb   : > { %s460_s19 = sshll.u32 %s568_s9, 6  ;;  %s88_s23 = scalar_lea.vmem [#allocation2], %s449_s18 }
   0xc   : > { %s94_s22 = scalar_lea.hbm %s745_s0, %s460_s19  ;;  %s97_s24 = sshll.u32 %s88_s23, 4  ;;  %s98_s24 = int_to_ptr.vmem [resolvable:$true] %s97_s24 }
   0xd   : > { %s95_s25 = sshll.u32 %s94_s22, 4  ;;  %p634_p8 = pnand %p467_p6, %p616_p4  ;;  %s96_s25 = int_to_ptr.hbm [resolvable:$true] %s95_s25 }
   0xe   : > { %p453_p9 = scmp.ge.s32.totalorder %s568_s9, 1  ;;  %s85_s27 = scalar_lea.sflag [#allocation3], %s84_s17 }
   0xf   : > { %s504_s28 = sshra.s32 %s96_s25, 4  ;;  %p508_p11 = pneg %p634_p8  ;;  %s505_s28 = int_to_ptr.hbm [resolvable:$true] %s504_s28 }
  0x10   : > { %s506_s29 = scalar_lea.hbm %s505_s28, 64  ;;  %s511_s3 = scalar_lea.hbm %s745_s0, 128 }
  0x11   : > { %p507_p10 = scmp.ne.s32.totalorder %s505_s28, %s506_s29  ;;  %p512_p0 = scmp.lt.s32.totalorder %s505_s28, %s745_s0 }
  0x12   : > { %p513_p1 = scmp.lt.s32.totalorder %s511_s3, %s506_s29 }
  0x13   : > { %p509_p12 = pnand %p508_p11, %p507_p10 }
  0x14   : > { %p514_p2 = por %p513_p1, %p512_p0 }
  0x15   : > { %p510_p13 = pneg %p509_p12 }
  0x17   : > { %p515_p3 = pnand %p514_p2, %p510_p13 }
  0x19   : > { %518 = shalt.err (!%p515_p3)
}
  0x1a   : > { %s570_s6 = smov 128   ;;  %s571_s12 = smov 8  }
  0x1b   : > { %466 = dma.hbm_to_vmem [thread:$0]  (!%p634_p8), %s96_s25, 1024, %s98_s24, %s85_s27, %s570_s6, %s570_s6, %s571_s12  }
  0x1c   : > { %p105_p4 = scmp.lt.s32.totalorder %s568_s9, 3 }
  0x1e   : > { %p106_p5 = pnand %p453_p9, %p105_p4 }
  0x1f   : > { %s111_s13 = sand.u32 (!%p106_p5), 1, %s560_s7  }
  0x20   : > { %109 = sbr.rel (%p106_p5) target bundleno = 210 (0xd2), region = 24  ;;  %s454_s15 = sshll.u32 (!%p106_p5), %s111_s13, 6 }
  0x21   : > { %s112_s17 = scalar_lea.sflag (!%p106_p5), [#allocation3], %s111_s13  ;;  %s115_s18 = scalar_lea.vmem (!%p106_p5), [#allocation2], %s454_s15 }
  0x25   : > { %551 = dma.done.wait (%p623_p7), %s112_s17, 1024  }
  0x26   : > { %553 = vsyncadd (%p623_p7), %s112_s17, 4294966272  ;;  %v146_v0 = vld [vmem:[%s115_s18 + $0x20] sm:$0xff]  ;;  %v147_v1 = vld [vmem:[%s115_s18 + $0x28] sm:$0xff]  ;;  %vm158_vm0 = vcmask 1046528   ;;  %vm187_vm1 = vcmask 1045504   ;;  %s572_s16 = smov 127  }
  0x27   : > { %v142_v2 = vld [vmem:[%s115_s18] sm:$0xff]  ;;  %v165_v3 = vrot.slane %v146_v0, 1  ;;  %v166_v4 = vrot.slane %v147_v1, 1  ;;  %v194_v5 = vrot.slane %v146_v0, 2  ;;  %v195_v6 = vrot.slane %v147_v1, 2  ;;  %v143_v7 = vld [vmem:[%s115_s18 + $0x8] sm:$0xff] }
  0x28   : > { %v144_v8 = vld [vmem:[%s115_s18 + $0x10] sm:$0xff]  ;;  %v159_v9 = vrot.slane %v142_v2, 1  ;;  %v160_v10 = vrot.slane %v143_v7, 1  ;;  %v188_v11 = vrot.slane %v142_v2, 2  ;;  %v189_v12 = vrot.slane %v143_v7, 2  ;;  %v145_v13 = vld [vmem:[%s115_s18 + $0x18] sm:$0xff] }
  0x29   : > { %v167_v14 = vsel %vm158_vm0, %v165_v3, %v166_v4  ;;  %v196_v15 = vsel %vm187_vm1, %v194_v5, %v195_v6  ;;  %v162_v16 = vrot.slane %v144_v8, 1  ;;  %v163_v17 = vrot.slane %v145_v13, 1  ;;  %v148_v18 = vld [vmem:[%s115_s18 + $0x30] sm:$0xff]  ;;  %v149_v22 = vld [vmem:[%s115_s18 + $0x38] sm:$0xff]  ;;  %s573_s19 = smov 126   ;;  %s455_s20 = sshll.u32 %s445_s10, 2 }
  0x2a   : > { %v183_v19 = vmax.f32 %v146_v0, %v167_v14  ;;  %v161_v20 = vsel %vm158_vm0, %v159_v9, %v160_v10  ;;  %v190_v21 = vsel %vm187_vm1, %v188_v11, %v189_v12  ;;  %v191_v24 = vrot.slane %v144_v8, 2  ;;  %p137_p6 = scmp.lt.s32.totalorder %s455_s20, 7 }
  0x2b   : > { %v179_v23 = vmax.f32 %v142_v2, %v161_v20  ;;  %v180_v25 = vmax.f32 %v143_v7, %v160_v10  ;;  %v164_v27 = vsel %vm158_vm0, %v162_v16, %v163_v17  ;;  %v192_v28 = vrot.slane %v145_v13, 2 }
  0x2c   : > { %v212_v26 = vmax.f32 %v183_v19, %v196_v15  ;;  %v168_v29 = vrot.slane %v148_v18, 1  ;;  %v169_v32 = vrot.slane %v149_v22, 1  ;;  %v197_v33 = vrot.slane %v148_v18, 2  ;;  %s755_s20 = smov (!%p137_p6, %s455_s20), 7 }
  0x2d   : > { %v208_v30 = vmax.f32 %v179_v23, %v190_v21  ;;  %v662_v31 = vmax.f32 %v180_v25, %v189_v12  ;;  %v198_v34 = vrot.slane %v149_v22, 2  ;;  %v181_v35 = vmax.f32 %v144_v8, %v164_v27  ;;  %s456_s9 = sshll.u32 %s755_s20, 3 }
  0x2e   : > { %232 = vrot.lane.b32.xlu1 %v212_v26, %s572_s16  ;;  %v170_v36 = vsel %vm158_vm0, %v168_v29, %v169_v32  ;;  %v193_v37 = vsel %vm187_vm1, %v191_v24, %v192_v28  ;;  %v182_v42 = vmax.f32 %v145_v13, %v163_v17  ;;  %v184_v44 = vmax.f32 %v147_v1, %v166_v4  ;;  %s700_s22 = scalar_lea.vmem %s746_s1, %s456_s9 }
  0x2f   : > { %224 = vrot.lane.b32.xlu0 %v208_v30, %s572_s16  ;;  %226 = vrot.lane.b32.xlu2 %v662_v31, %s572_s16  ;;  %v185_v38 = vmax.f32 %v148_v18, %v170_v36  ;;  %v199_v39 = vsel %vm187_vm1, %v197_v33, %v198_v34  ;;  %v210_v40 = vmax.f32 %v181_v35, %v193_v37  ;;  %vm344_vm2 = vcmask 1040384  }
  0x30   : > { %v676_v43 = vmax.f32 %v182_v42, %v192_v28  ;;  %v213_v45 = vmax.f32 %v184_v44, %v195_v6  ;;  %v186_v46 = vmax.f32 %v149_v22, %v169_v32  ;;  %vm349_vm3 = vcmask 1041408  }
  0x31   : > { %v671_v41 = vmax.f32 %v185_v38, %v199_v39  ;;  %vm354_vm4 = vcmask 1042432   ;;  %vm359_vm5 = vcmask 1043456   ;;  %vm364_vm6 = vcmask 1044480  }
  0x32   : > { %v683_v47 = vmax.f32 %v186_v46, %v198_v34  ;;  %vm373_vm7 = vcmask 112640  }
  0x36   : > { %256 = vrot.lane.b32.xlu1 %v208_v30, %s573_s19 }
  0x37   : > { %228 = vrot.lane.b32.xlu0 %v210_v40, %s572_s16  ;;  %236 = vrot.lane.b32.xlu2 %v671_v41, %s572_s16 }
  0x3e   : > { %230 = vrot.lane.b32.xlu1 %v676_v43, %s572_s16 }
  0x3f   : > { %260 = vrot.lane.b32.xlu0 %v210_v40, %s573_s19  ;;  %264 = vrot.lane.b32.xlu2 %v212_v26, %s573_s19 }
  0x46   : > { %258 = vrot.lane.b32.xlu1 %v662_v31, %s573_s19 }
  0x47   : > { %234 = vrot.lane.b32.xlu0 %v213_v45, %s572_s16  ;;  %268 = vrot.lane.b32.xlu2 %v671_v41, %s573_s19 }
  0x4e   : > { %262 = vrot.lane.b32.xlu1 %v676_v43, %s573_s19 }
  0x4f   : > { %238 = vrot.lane.b32.xlu0 %v683_v47, %s572_s16  ;;  %266 = vrot.lane.b32.xlu2 %v213_v45, %s573_s19 }
  0x57   : > { %270 = vrot.lane.b32.xlu0 %v683_v47, %s573_s19 }
  0x89   : > { %v227_v48 = vpop.permute.xlu2 %226 }
  0x8a   : > { %v249_v3 = vmax.f32 %v662_v31, %v227_v48 }
  0x91   : > { %v237_v49 = vpop.permute.xlu2 %236 }
  0x92   : > { %v254_v6 = vmax.f32 %v671_v41, %v237_v49 }
  0x99   : > { %v265_v52 = vpop.permute.xlu2 %264 }
  0xa0   : > { %v233_v50 = vpop.permute.xlu1 %232 }
  0xa1   : > { %v225_v51 = vpop.permute.xlu0 %224  ;;  %v252_v57 = vmax.f32 %v212_v26, %v233_v50  ;;  %v269_v59 = vpop.permute.xlu2 %268 }
  0xa2   : > { %v248_v55 = vmax.f32 %v208_v30, %v225_v51  ;;  %v286_v28 = vmax.f32 %v254_v6, %v269_v59 }
  0xa3   : > { %v284_v62 = vmax.f32 %v252_v57, %v265_v52 }
  0xa4   : > { %v295_v39 = vrot.slane %v286_v28, 1  ;;  %v303_v46 = vrot.slane %v286_v28, 2 }
  0xa5   : > { %v294_v4 = vrot.slane %v284_v62, 1  ;;  %v302_v11 = vrot.slane %v284_v62, 2  ;;  %v310_v20 = vrot.slane %v284_v62, 3 }
  0xa6   : > { %v348_v50 = vsel %vm344_vm2, %v286_v28, %v295_v39 }
  0xa7   : > { %v347_v15 = vsel %vm344_vm2, %v284_v62, %v294_v4 }
  0xa8   : > { %v257_v53 = vpop.permute.xlu1 %256  ;;  %v352_v24 = vsel %vm349_vm3, %v347_v15, %v302_v11 }
  0xa9   : > { %v229_v54 = vpop.permute.xlu0 %228  ;;  %v280_v56 = vmax.f32 %v248_v55, %v257_v53  ;;  %v267_v10 = vpop.permute.xlu2 %266  ;;  %v357_v33 = vsel %vm354_vm4, %v352_v24, %v310_v20 }
  0xaa   : > { %v250_v63 = vmax.f32 %v210_v40, %v229_v54  ;;  %v311_v54 = vrot.slane %v286_v28, 3 }
  0xab   : > { %v292_v61 = vrot.slane %v280_v56, 1  ;;  %v300_v0 = vrot.slane %v280_v56, 2  ;;  %v308_v12 = vrot.slane %v280_v56, 3 }
  0xad   : > { %v345_v1 = vsel %vm344_vm2, %v280_v56, %v292_v61  ;;  %v353_v56 = vsel %vm349_vm3, %v348_v50, %v303_v46 }
  0xae   : > { %v350_v7 = vsel %vm349_vm3, %v345_v1, %v300_v0 }
  0xaf   : > { %v355_v18 = vsel %vm354_vm4, %v350_v7, %v308_v12 }
  0xb0   : > { %v231_v58 = vpop.permute.xlu1 %230 }
  0xb1   : > { %v261_v60 = vpop.permute.xlu0 %260  ;;  %v251_v29 = vmax.f32 %v676_v43, %v231_v58 }
  0xb2   : > { %v282_v2 = vmax.f32 %v250_v63, %v261_v60  ;;  %v358_v60 = vsel %vm354_vm4, %v353_v56, %v311_v54 }
  0xb4   : > { %v293_v13 = vrot.slane %v282_v2, 1  ;;  %v301_v21 = vrot.slane %v282_v2, 2  ;;  %v309_v37 = vrot.slane %v282_v2, 3 }
  0xb6   : > { %v346_v25 = vsel %vm344_vm2, %v282_v2, %v293_v13 }
  0xb7   : > { %v351_v32 = vsel %vm349_vm3, %v346_v25, %v301_v21 }
  0xb8   : > { %v259_v5 = vpop.permute.xlu1 %258  ;;  %v356_v42 = vsel %vm354_vm4, %v351_v32, %v309_v37 }
  0xb9   : > { %v281_v8 = vmax.f32 %v249_v3, %v259_v5  ;;  %v235_v9 = vpop.permute.xlu0 %234 }
  0xba   : > { %v253_v14 = vmax.f32 %v213_v45, %v235_v9 }
  0xbb   : > { %v320_v16 = vrot.slane %v281_v8, 4  ;;  %v328_v17 = vrot.slane %v281_v8, 5  ;;  %v336_v22 = vrot.slane %v281_v8, 6 }
  0xbc   : > { %v285_v19 = vmax.f32 %v253_v14, %v267_v10 }
  0xbd   : > { %v360_v23 = vsel %vm359_vm5, %v355_v18, %v320_v16 }
  0xbe   : > { %v365_v26 = vsel %vm364_vm6, %v360_v23, %v328_v17  ;;  %v322_v27 = vrot.slane %v285_v19, 4  ;;  %v330_v34 = vrot.slane %v285_v19, 5  ;;  %v338_v48 = vrot.slane %v285_v19, 6 }
  0xbf   : > { %v369_v30 = vsel %vm187_vm1, %v365_v26, %v336_v22 }
  0xc0   : > { %374 = vst.msk [vmem:[%s700_s22] sm:$0x7f] %vm373_vm7, %v369_v30  ;;  %v263_v31 = vpop.permute.xlu1 %262  ;;  %v362_v38 = vsel %vm359_vm5, %v357_v33, %v322_v27 }
  0xc1   : > { %v283_v35 = vmax.f32 %v251_v29, %v263_v31  ;;  %v239_v36 = vpop.permute.xlu0 %238  ;;  %v367_v43 = vsel %vm364_vm6, %v362_v38, %v330_v34 }
  0xc2   : > { %v371_v52 = vsel %vm187_vm1, %v367_v43, %v338_v48  ;;  %v255_v53 = vmax.f32 %v683_v47, %v239_v36 }
  0xc3   : > { %v321_v40 = vrot.slane %v283_v35, 4  ;;  %v329_v41 = vrot.slane %v283_v35, 5  ;;  %v337_v44 = vrot.slane %v283_v35, 6  ;;  %376 = vst.msk [vmem:[%s700_s22 + $0x10] sm:$0x7f] %vm373_vm7, %v371_v52 }
  0xc5   : > { %v361_v45 = vsel %vm359_vm5, %v356_v42, %v321_v40 }
  0xc6   : > { %v366_v49 = vsel %vm364_vm6, %v361_v45, %v329_v41 }
  0xc7   : > { %v370_v51 = vsel %vm187_vm1, %v366_v49, %v337_v44 }
  0xc8   : > { %375 = vst.msk [vmem:[%s700_s22 + $0x8] sm:$0x7f] %vm373_vm7, %v370_v51 }
  0xc9   : > { %v271_v55 = vpop.permute.xlu0 %270 }
  0xca   : > { %v287_v57 = vmax.f32 %v255_v53, %v271_v55 }
  0xcc   : > { %v323_v58 = vrot.slane %v287_v57, 4  ;;  %v331_v59 = vrot.slane %v287_v57, 5  ;;  %v339_v61 = vrot.slane %v287_v57, 6 }
  0xce   : > { %v363_v62 = vsel %vm359_vm5, %v358_v60, %v323_v58 }
  0xcf   : > { %v368_v63 = vsel %vm364_vm6, %v363_v62, %v331_v59 }
  0xd0   : > { %v372_v0 = vsel %vm187_vm1, %v368_v63, %v339_v61 }
  0xd1   : > { %377 = vst.msk [vmem:[%s700_s22 + $0x18] sm:$0x7f] %vm373_vm7, %v372_v0 }
  0xd2 PF: > { %p11_p7 = scmp.ge.s32.totalorder %s604_s11, 4   ;;  %s750_s6 = smov %s560_s7 }
  0xd3   : > { %s751_s7 = smov %s564_s8  ;;  %s752_s8 = smov %s614_s14 }
  0xd4   : > { %s753_s9 = smov %s604_s11  ;;  %13 = sbr.rel (!%p11_p7) target bundleno = 3 (0x3), region = 64 }
  0xd9   :  { %400 = vsyncpa [#allocation3], 1 }
  0xda   :  { %402 = vsyncpa [#allocation3 + $0x1], 1 }

</bundles_post_ra>
